<compile_context>
chip_gen: v7x
topology: tpu7x:2x2x1
jax: 0.10.0
libtpu: 0.0.40
codegen_flags: <defaults>
</compile_context>

<pallas_src>
import jax
import jax.numpy as jnp
from jax.experimental import pallas as pl
from jax.experimental.pallas import tpu as pltpu


def _masked_max_kernel(h_ref, m_ref, o_ref):
    # h_ref: (tb, ts, th) input tile (native dtype)
    # m_ref: (tb, ts, 1)  attention-mask tile (int)
    # o_ref: (tb, th)     accumulator / output tile (resident across the S axis)
    @pl.when(pl.program_id(2) == 0)
    def _init():
        o_ref[...] = jnp.full(o_ref.shape, -1.0e9, dtype=o_ref.dtype)

    h = h_ref[...]
    m = m_ref[...]                                   # (tb, ts, 1)
    neg_large = jnp.asarray(-1.0e9, dtype=h.dtype)
    masked = jnp.where(m != 0, h, neg_large)         # lane broadcast along H
    tile_max = jnp.max(masked, axis=1)               # (tb, th)
    o_ref[...] = jnp.maximum(o_ref[...], tile_max)


def _pick_tile(dim, unit, max_tile):
    """Largest multiple of `unit` that divides `dim` and is <= max_tile,
    else the full dim (full-extent blocks always satisfy TPU tiling rules)."""
    if dim % unit != 0:
        return dim
    t = min(max_tile, dim)
    t = (t // unit) * unit
    while t >= unit:
        if dim % t == 0:
            return t
        t -= unit
    return dim


def max_pooling(last_hidden_state, attention_mask):
    """Masked max-pooling over the sequence dimension.

    Args:
      last_hidden_state: [B, S, H] float array (any float dtype; streamed as-is).
      attention_mask:    [B, S] array (nonzero = keep, zero = masked out).

    Returns:
      [B, H] array in the input dtype: per-feature max over unmasked positions.
    """
    B, S, H = last_hidden_state.shape
    h = last_hidden_state
    # Keep mask integral; reshape so S lands on sublanes (matches h's layout).
    m = attention_mask.astype(jnp.int32).reshape(B, S, 1)

    # Tile sizes: must divide exactly and respect the (8, 128) rule (or be full extent).
    tb = 8 if (B % 8 == 0 and B > 8) else B
    ts = _pick_tile(S, 8, 512)
    th = _pick_tile(H, 128, 512)

    grid = (B // tb, H // th, S // ts)  # S (reduction) axis last

    return pl.pallas_call(
        _masked_max_kernel,
        out_shape=jax.ShapeDtypeStruct((B, H), h.dtype),
        grid_spec=pltpu.PrefetchScalarGridSpec(
            num_scalar_prefetch=0,
            grid=grid,
            in_specs=[
                pl.BlockSpec((tb, ts, th), lambda i, j, k: (i, k, j)),
                pl.BlockSpec((tb, ts, 1), lambda i, j, k: (i, k, 0)),
            ],
            out_specs=pl.BlockSpec((tb, th), lambda i, j, k: (i, j)),
        ),
        compiler_params=pltpu.CompilerParams(
            dimension_semantics=("parallel", "parallel", "arbitrary")
        ),
    )(h, m)


def _reference(h, mask):
    neg = jnp.asarray(-1.0e9, dtype=h.dtype)
    masked = jnp.where(mask[:, :, None] == 0, neg, h)
    return jnp.max(masked, axis=1)


if __name__ == "__main__":
    key = jax.random.PRNGKey(0)
    k1, k2, k3 = jax.random.split(key, 3)

    # --- Small test (module-sized shapes): B=2, S=8, H=32, f32 ---
    B, S, H = 2, 8, 32
    last_hidden_state = jax.random.normal(k1, (B, S, H), dtype=jnp.float32)
    lengths = jnp.array([5, 3], dtype=jnp.int32)
    attention_mask = (jnp.arange(S)[None, :] < lengths[:, None]).astype(jnp.int32)

    out = max_pooling(last_hidden_state, attention_mask)
    out = jax.block_until_ready(out)
    ref = _reference(last_hidden_state, attention_mask)
    assert out.shape == (B, H)
    assert out.dtype == last_hidden_state.dtype
    assert jnp.allclose(out, ref, atol=1e-6), "small-shape mismatch vs reference"

    # --- Larger bf16 test to exercise the multi-step reduction grid ---
    B2, S2, H2 = 8, 1024, 256
    h2 = jax.random.normal(k2, (B2, S2, H2), dtype=jnp.bfloat16)
    lengths2 = jax.random.randint(k3, (B2,), 1, S2 + 1)
    mask2 = (jnp.arange(S2)[None, :] < lengths2[:, None]).astype(jnp.int32)

    out2 = max_pooling(h2, mask2)
    out2 = jax.block_until_ready(out2)
    ref2 = _reference(h2, mask2)
    assert out2.shape == (B2, H2)
    assert out2.dtype == jnp.bfloat16
    assert jnp.allclose(out2.astype(jnp.float32), ref2.astype(jnp.float32)), \
        "bf16 tiled mismatch vs reference"

    print("KERNEL_OK")
</pallas_src>

<mosaic_0001>
module attributes {stable_mosaic.version = 11 : i64} {
  func.func @_masked_max_kernel(%arg0: i32, %arg1: i32, %arg2: i32, %arg3: memref<2x8x32xf32, #tpu.memory_space<vmem>>, %arg4: memref<2x8x1xi32, #tpu.memory_space<vmem>>, %arg5: memref<2x32xf32, #tpu.memory_space<vmem>>) attributes {dimension_semantics = [#tpu.dimension_semantics<parallel>, #tpu.dimension_semantics<parallel>, #tpu.dimension_semantics<arbitrary>], iteration_bounds = array<i64: 1, 1, 1>, scalar_prefetch = 0 : i64, scratch_operands = 0 : i64, tpu.core_type = #tpu.core_type<tc>, window_params = [{transform_indices = @transform_0, window_bounds = array<i64: 2, 8, 32>}, {transform_indices = @transform_1, window_bounds = array<i64: 2, 8, 1>}, {transform_indices = @transform_2, window_bounds = array<i64: 2, 32>}]} {
    %c0_i32 = arith.constant 0 : i32
    %0 = arith.cmpi eq, %arg2, %c0_i32 : i32
    %1 = arith.extui %0 : i1 to i32
    %c0_i32_0 = arith.constant 0 : i32
    %2 = arith.cmpi ne, %1, %c0_i32_0 : i32
    scf.if %2 {
      %cst_12 = arith.constant -1.000000e+09 : f32
      %15 = vector.broadcast %cst_12 : f32 to vector<2x32xf32>
      %c0_13 = arith.constant 0 : index
      %c0_14 = arith.constant 0 : index
      %16 = vector.load %arg5[%c0_13, %c0_14] : memref<2x32xf32, #tpu.memory_space<vmem>>, vector<2x32xf32>
      tpu.vector_store %arg5[%c0_13, %c0_14], %15 {strides = array<i32>} : memref<2x32xf32, #tpu.memory_space<vmem>>, vector<2x32xf32>,
    } else {
    }
    %c0 = arith.constant 0 : index
    %c0_1 = arith.constant 0 : index
    %c0_2 = arith.constant 0 : index
    %3 = vector.load %arg3[%c0, %c0_1, %c0_2] : memref<2x8x32xf32, #tpu.memory_space<vmem>>, vector<2x8x32xf32>
    %c0_3 = arith.constant 0 : index
    %c0_4 = arith.constant 0 : index
    %c0_5 = arith.constant 0 : index
    %4 = vector.load %arg4[%c0_3, %c0_4, %c0_5] : memref<2x8x1xi32, #tpu.memory_space<vmem>>, vector<2x8x1xi32>
    %c0_i32_6 = arith.constant 0 : i32
    %5 = vector.broadcast %c0_i32_6 : i32 to vector<2x8x1xi32>
    %6 = arith.cmpi ne, %4, %5 : vector<2x8x1xi32>
    %cst = arith.constant -1.000000e+09 : f32
    %7 = vector.shape_cast %6 : vector<2x8x1xi1> to vector<2x8x1xi1>
    %8 = vector.broadcast %7 : vector<2x8x1xi1> to vector<2x8x32xi1>
    %9 = vector.broadcast %cst : f32 to vector<2x8x32xf32>
    %10 = arith.select %8, %3, %9 : vector<2x8x32xi1>, vector<2x8x32xf32>
    %cst_7 = arith.constant dense<0xFF800000> : vector<2x32xf32>
    %11 = vector.multi_reduction <maximumf>, %10, %cst_7 [1] : vector<2x8x32xf32> to vector<2x32xf32>
    %c0_8 = arith.constant 0 : index
    %c0_9 = arith.constant 0 : index
    %12 = vector.load %arg5[%c0_8, %c0_9] : memref<2x32xf32, #tpu.memory_space<vmem>>, vector<2x32xf32>
    %13 = arith.maximumf %12, %11 : vector<2x32xf32>
    %c0_10 = arith.constant 0 : index
    %c0_11 = arith.constant 0 : index
    %14 = vector.load %arg5[%c0_10, %c0_11] : memref<2x32xf32, #tpu.memory_space<vmem>>, vector<2x32xf32>
    tpu.vector_store %arg5[%c0_10, %c0_11], %13 {strides = array<i32>} : memref<2x32xf32, #tpu.memory_space<vmem>>, vector<2x32xf32>,
    return
  }
  func.func @transform_0(%arg0: i32, %arg1: i32, %arg2: i32) -> (i32, i32, i32) {
    %c0_i32 = arith.constant 0 : i32
    return %arg0, %arg2, %arg1 : i32, i32, i32
  }
  func.func @transform_1(%arg0: i32, %arg1: i32, %arg2: i32) -> (i32, i32, i32) {
    %c0_i32 = arith.constant 0 : i32
    %c0_i32_0 = arith.constant 0 : i32
    return %arg0, %arg2, %c0_i32 : i32, i32, i32
  }
  func.func @transform_2(%arg0: i32, %arg1: i32, %arg2: i32) -> (i32, i32) {
    %c0_i32 = arith.constant 0 : i32
    return %arg0, %arg1 : i32, i32
  }
}

</mosaic_0001>

<bundles_post_ra>
// kernel: tpu_custom_call.1
= control target key start
LH: loop header
LB: loop body
LE: loop exit
PB: predicated region body
PF: predicated region fallthrough
CT: control target
= control target key end

     0   :  { %s146_s0 = inlined_call_operand.vmem [shape: f32[2,8,32], index: 0, kind: input, shape index: {}]   ;;  %s147_s1 = inlined_call_operand.vmem [shape: s32[2,8,1], index: 1, kind: input, shape index: {}]   ;;  %s148_s2 = inlined_call_operand.hbm [shape: f32[2,32], index: 2, kind: output, shape index: {}]  }
   0x1   :  { %v20_v0 = vld [vmem:[%s147_s1] sm:$0xff]  ;;  %v21_v1 = vld [vmem:[%s147_s1 + $0x8] sm:$0xff] }
   0x2   :  { %7 = vsyncpa [#allocation3], 0  ;;  %v102_v2 = vmov 0   ;;  %vm22_vm0 = vcmp.ne.s32.totalorder %v20_v0, 0  ;;  %vm23_vm1 = vcmp.ne.s32.totalorder %v21_v1, 0  ;;  %vm16_vm2 = vcmask 254976  }
   0x3   :  { %77 = vset.pattern.permute.xlu0 %v102_v2  ;;  %v24_v3 = vsel %vm22_vm0, 1, %v102_v2  ;;  %v25_v4 = vsel %vm23_vm1, 1, %v102_v2  ;;  %v103_v5 = vmov -1e+09   ;;  %v18_v6 = vld [vmem:[%s146_s0] sm:$0xff]  ;;  %vm36_vm3 = vcmask 261120  }
   0x4   :  { %27 = vperm.xlu0 %77, %v24_v3   ;;  %17 = vst.msk [vmem:[#allocation2] sm:$0x3] %vm16_vm2, %v103_v5  ;;  %v19_v10 = vld [vmem:[%s146_s0 + $0x8] sm:$0xff]  ;;  %vm54_vm6 = vcmask 1041409   ;;  %s104_s16 = smov [#allocation2]  }
   0x5   :  { %s66_s0 = sshll.u32 %s104_s16, 4  ;;  %s67_s0 = int_to_ptr.vmem [resolvable:$true] %s66_s0 }
   0x6   :  { %s78_s17 = scalar_lea.vmem %s67_s0, 32  ;;  %p83_p1 = scmp.lt.s32.totalorder %s67_s0, %s67_s0 }
   0x7   :  { %p79_p0 = scmp.ne.s32.totalorder %s67_s0, %s78_s17  ;;  %p84_p2 = scmp.lt.s32.totalorder %s78_s17, %s78_s17 }
   0x8   :  { %30 = vperm.xlu0 %77, %v25_v4  }
   0x9   :  { %p85_p3 = por %p84_p2, %p83_p1 }
   0xb   :  { %v51_v26 = vld [vmem:[#allocation2] sm:$0x3]  ;;  %p86_p4 = pnand %p85_p3, %p79_p0 }
  0x83   :  { %v28_v7 = vpop.permute.xlu0 %27 }
  0x84   :  { %vm32_vm4 = vcmp.eq.s32.totalorder %v28_v7, 1 }
  0x85   :  { %v34_v8 = vsel %vm32_vm4, %v18_v6, -1e+09 }
  0x86   :  { %v37_v9 = vsel %vm36_vm3, %v34_v8, -inf }
  0x87   :  { %v38_v11 = vrot.slane %v37_v9, 4  ;;  %v31_v12 = vpop.permute.xlu0 %30 }
  0x88   :  { %vm33_vm5 = vcmp.eq.s32.totalorder %v31_v12, 1 }
  0x89   :  { %v39_v13 = vmax.f32 %v37_v9, %v38_v11  ;;  %v35_v14 = vsel %vm33_vm5, %v19_v10, -1e+09 }
  0x8a   :  { %v44_v15 = vsel %vm36_vm3, %v35_v14, -inf }
  0x8b   :  { %v40_v16 = vrot.slane %v39_v13, 2  ;;  %v45_v17 = vrot.slane %v44_v15, 4 }
  0x8d   :  { %v41_v18 = vmax.f32 %v39_v13, %v40_v16  ;;  %v46_v19 = vmax.f32 %v44_v15, %v45_v17 }
  0x8f   :  { %v47_v20 = vrot.slane %v46_v19, 2  ;;  %v42_v21 = vrot.slane %v41_v18, 1 }
  0x91   :  { %v48_v22 = vmax.f32 %v46_v19, %v47_v20  ;;  %v43_v24 = vmax.f32 %v41_v18, %v42_v21 }
  0x93   :  { %v49_v23 = vrot.slane %v48_v22, 1 }
  0x95   :  { %v50_v25 = vmax.f32 %v48_v22, %v49_v23 }
  0x97   :  { %v55_v27 = vsel %vm54_vm6, %v50_v25, %v43_v24 }
  0x98   :  { %v57_v28 = vmax.f32 %v51_v26, %v55_v27 }
  0x9a   :  { %59 = vst.msk [vmem:[#allocation2] sm:$0x3] %vm16_vm2, %v57_v28 }
  0x9b   :  { %89 = shalt.err (!%p86_p4)
}
  0x9c   :  { %s90_s20 = scalar_lea.hbm %s148_s2, 32 }
  0x9d   :  { %p91_p5 = scmp.ne.s32.totalorder %s148_s2, %s90_s20  ;;  %p94_p6 = scmp.lt.u32.totalorder %s90_s20, %s148_s2 }
  0x9f   :  { %p96_p7 = pnand %p94_p6, %p91_p5 }
  0xa1   :  { %99 = shalt.err (!%p96_p7)
}
  0xa2   :  { %69 = dma.vmem_to_hbm [thread:$0]  %s67_s0, 32, %s148_s2, [#allocation3]  }
  0xa3   :  { %100 = dma.done.wait [#allocation3], 32  }
  0xa4   :  { %101 = vsyncadd [#allocation3], 4294967264 }
  0xa5   :  { %73 = vsyncpa [#allocation3], 1 }

</bundles_post_ra>
